<compile_context>
chip_gen: v7x
topology: tpu7x:2x2x1
jax: 0.10.0
libtpu: 0.0.40
codegen_flags: <defaults>
</compile_context>

<pallas_src>
import functools

import jax
import jax.numpy as jnp
from jax import lax
from jax.experimental import pallas as pl
from jax.experimental.pallas import tpu as pltpu

LANE = 128      # lane padding for every output feature dim
SUBLANE = 8     # sublane granularity for the packed weight slab


def _round_up(x, m):
    return (x + m - 1) // m * m


def _fused_gcn_kernel(a_ref, x_ref, wb_ref, o_ref, *, layer_meta):
    """Fused GCN forward: symmetric-norm aggregation + all layers in one body.

    a_ref : (N, N)   bf16 adjacency (no self loops; handled analytically)
    x_ref : (N, 128) f32 node features, zero padded on lanes
    wb_ref: (R, 128) bf16 packed slab [W_0; b_0; W_1; b_1; ...]
    o_ref : (N, 128) f32 softmax probabilities (padded lanes exactly 0)
    layer_meta: static tuple of (w_row, f_in_pad, b_row, f_out)
    """
    a = a_ref[...]                                            # (N, N) bf16
    # Degree of (A + I) without materializing the NxN identity.
    deg = jnp.sum(a.astype(jnp.float32), axis=1, keepdims=True) + 1.0
    d_inv_sqrt = lax.rsqrt(deg)                               # (N, 1) f32, deg >= 1

    h = x_ref[...]                                            # (N, 128) f32
    n_layers = len(layer_meta)
    for i, (w_row, f_in_pad, b_row, f_out) in enumerate(layer_meta):
        w = wb_ref[w_row:w_row + f_in_pad, :]                 # (f_in_pad, 128) bf16
        b = wb_ref[b_row:b_row + 1, :].astype(jnp.float32)    # (1, 128) f32

        # Aggregate first: the (NxN) matmul's RHS stays f_in_pad (<=32) lanes.
        #   A_hat @ hs = d * (A @ (d*hs) + (d*hs))
        hs = h[:, :f_in_pad]                                  # lane slice, f32
        dh = d_inv_sqrt * hs                                  # (N, f_in_pad) f32
        agg = jnp.dot(a, dh.astype(jnp.bfloat16),
                      preferred_element_type=jnp.float32)
        ah = d_inv_sqrt * (agg + dh)                          # (N, f_in_pad) f32

        z = jnp.dot(ah.astype(jnp.bfloat16), w,
                    preferred_element_type=jnp.float32) + b   # (N, 128) f32

        if i != n_layers - 1:
            h = jnp.maximum(z, 0.0)            # ReLU; padded lanes stay exactly 0
        else:
            # Softmax over the true output lanes only (padded lanes -> 0 prob).
            lane = lax.broadcasted_iota(jnp.int32, z.shape, 1)
            z = jnp.where(lane < f_out, z, -1e30)
            m = jnp.max(z, axis=-1, keepdims=True)
            e = jnp.exp(z - m)
            denom = jnp.sum(e, axis=-1, keepdims=True)
            h = e * pl.reciprocal(denom, approx=True)
    o_ref[...] = h


def prepare_packed_params(params, pad=LANE):
    """One-time prep: pack all (W, b) into a single bf16 slab.

    W_i -> (round_up(f_in, 8), 128), zero padded; b_i -> one 8-row block with
    the bias in row 0.  Returns (slab, layer_meta) where
    layer_meta[i] = (w_row_offset, f_in_pad, b_row_offset, f_out).
    """
    blocks, meta, row = [], [], 0
    for w, b in params:
        f_in, f_out = int(w.shape[0]), int(w.shape[1])
        assert f_out <= pad, "output feature dim must fit in one lane tile"
        f_in_pad = _round_up(f_in, SUBLANE)
        wp = jnp.zeros((f_in_pad, pad), jnp.float32).at[:f_in, :f_out].set(
            w.astype(jnp.float32))
        bp = jnp.zeros((SUBLANE, pad), jnp.float32).at[0, :f_out].set(
            b.astype(jnp.float32))
        blocks += [wp, bp]
        meta.append((row, f_in_pad, row + f_in_pad, f_out))
        row += f_in_pad + SUBLANE
    slab = jnp.concatenate(blocks, axis=0).astype(jnp.bfloat16)
    return slab, tuple(meta)


def deep_graph_nn_forward(adj, x, wb_slab, layer_meta, pad=LANE):
    """Inference forward pass (dropout = identity): a single fused pallas_call."""
    n, f_in0 = x.shape
    out_dim = layer_meta[-1][3]
    xp = jnp.zeros((n, pad), jnp.float32).at[:, :f_in0].set(x.astype(jnp.float32))
    a_bf16 = adj.astype(jnp.bfloat16)       # binary adjacency: exact in bf16

    # Advisory cost / VMEM hints (start mattering once N grows).
    flops = sum(2 * n * n * fp + 2 * n * fp * pad for _, fp, _, _ in layer_meta)
    bytes_accessed = (a_bf16.size * 2 + xp.size * 4
                      + wb_slab.size * 2 + n * pad * 4)
    vmem_limit = int(min(96 * 1024 * 1024,
                         max(32 * 1024 * 1024, 8 * bytes_accessed)))

    kernel = functools.partial(_fused_gcn_kernel, layer_meta=layer_meta)
    vmem = pl.BlockSpec(memory_space=pltpu.MemorySpace.VMEM)
    out_padded = pl.pallas_call(
        kernel,
        out_shape=jax.ShapeDtypeStruct((n, pad), jnp.float32),
        in_specs=[vmem, vmem, vmem],
        out_specs=vmem,
        compiler_params=pltpu.CompilerParams(vmem_limit_bytes=vmem_limit),
        cost_estimate=pl.CostEstimate(
            flops=int(flops),
            transcendentals=int(n * pad + n),
            bytes_accessed=int(bytes_accessed)),
    )(a_bf16, xp, wb_slab)
    # Lane-dense (N, 128) store in-kernel; slice the true output dim here.
    return out_padded[:, :out_dim]


def init_params(key, input_dim, output_dim, hidden_sizes=(32, 32)):
    """Deterministic Glorot-style init matching the layer shapes of __init__."""
    dims = [input_dim] + list(hidden_sizes) + [output_dim]
    params = []
    for i in range(len(dims) - 1):
        key, kw, kb = jax.random.split(key, 3)
        fin, fout = dims[i], dims[i + 1]
        limit = jnp.sqrt(6.0 / (fin + fout))
        w = jax.random.uniform(kw, (fin, fout), jnp.float32, -limit, limit)
        b = jnp.zeros((fout,), jnp.float32)
        params.append((w, b))
    return params


def reference_forward(adj, x, params):
    """Plain-JAX f32 reference (same math, unpadded) for correctness checking."""
    n = adj.shape[0]
    a1 = adj + jnp.eye(n, dtype=jnp.float32)
    deg = jnp.sum(a1, axis=1)
    dis = 1.0 / jnp.sqrt(jnp.maximum(deg, 1e-12))
    a_hat = a1 * dis[:, None] * dis[None, :]
    h = x
    for i, (w, b) in enumerate(params):
        z = a_hat @ h @ w + b
        h = jnp.maximum(z, 0.0) if i != len(params) - 1 else jax.nn.softmax(z, -1)
    return h


if __name__ == "__main__":
    key = jax.random.PRNGKey(0)

    N = 16          # number of graph nodes
    INPUT_DIM = 8
    OUTPUT_DIM = 4
    HIDDEN = (32, 32)

    k_adj, k_x, k_p = jax.random.split(key, 3)

    # Symmetric binary adjacency (no self-loops; handled inside the kernel).
    upper = (jax.random.uniform(k_adj, (N, N)) > 0.7).astype(jnp.float32)
    adj = jnp.triu(upper, 1)
    adj = adj + adj.T

    x = jax.random.normal(k_x, (N, INPUT_DIM), jnp.float32)
    params = init_params(k_p, INPUT_DIM, OUTPUT_DIM, HIDDEN)
    wb_slab, layer_meta = prepare_packed_params(params)     # one-time prep

    out = deep_graph_nn_forward(adj, x, wb_slab, layer_meta)
    out = jax.block_until_ready(out)

    assert out.shape == (N, OUTPUT_DIM)
    # Final softmax rows must sum to ~1 and match the plain-JAX f32 reference
    # (bf16 matmul operands + approx reciprocal -> slightly looser element atol).
    ref = reference_forward(adj, x, params)
    assert jnp.allclose(jnp.sum(out, axis=-1), 1.0, atol=1e-2)
    assert jnp.allclose(out, ref, atol=2e-2)

    print("KERNEL_OK")
</pallas_src>

<mosaic_0001>
module attributes {stable_mosaic.version = 11 : i64} {
  func.func @_fused_gcn_kernel(%arg0: memref<16x16xbf16, #tpu.memory_space<vmem>>, %arg1: memref<16x128xf32, #tpu.memory_space<vmem>>, %arg2: memref<96x128xbf16, #tpu.memory_space<vmem>>, %arg3: memref<16x128xf32, #tpu.memory_space<vmem>>) attributes {dimension_semantics = [], scalar_prefetch = 0 : i64, scratch_operands = 0 : i64, tpu.core_type = #tpu.core_type<tc>} {
    %c0 = arith.constant 0 : index
    %c0_0 = arith.constant 0 : index
    %0 = vector.load %arg0[%c0, %c0_0] : memref<16x16xbf16, #tpu.memory_space<vmem>>, vector<16x16xbf16>
    %1 = arith.extf %0 : vector<16x16xbf16> to vector<16x16xf32>
    %cst = arith.constant dense<0.000000e+00> : vector<16xf32>
    %2 = vector.multi_reduction <add>, %1, %cst [1] : vector<16x16xf32> to vector<16xf32>
    %3 = vector.shape_cast %2 : vector<16xf32> to vector<16x1xf32>
    %cst_1 = arith.constant 1.000000e+00 : f32
    %4 = vector.broadcast %cst_1 : f32 to vector<16x1xf32>
    %5 = arith.addf %3, %4 : vector<16x1xf32>
    %6 = math.rsqrt %5 : vector<16x1xf32>
    %c0_2 = arith.constant 0 : index
    %c0_3 = arith.constant 0 : index
    %7 = vector.load %arg1[%c0_2, %c0_3] : memref<16x128xf32, #tpu.memory_space<vmem>>, vector<16x128xf32>
    %c0_4 = arith.constant 0 : index
    %c0_5 = arith.constant 0 : index
    %8 = vector.load %arg2[%c0_4, %c0_5] : memref<96x128xbf16, #tpu.memory_space<vmem>>, vector<8x128xbf16>
    %c8 = arith.constant 8 : index
    %c0_6 = arith.constant 0 : index
    %9 = vector.load %arg2[%c8, %c0_6] : memref<96x128xbf16, #tpu.memory_space<vmem>>, vector<1x128xbf16>
    %10 = arith.extf %9 : vector<1x128xbf16> to vector<1x128xf32>
    %11 = vector.extract_strided_slice %7 {offsets = [0, 0], sizes = [16, 8], strides = [1, 1]} : vector<16x128xf32> to vector<16x8xf32>
    %12 = vector.broadcast %6 : vector<16x1xf32> to vector<16x8xf32>
    %13 = arith.mulf %12, %11 : vector<16x8xf32>
    %14 = arith.truncf %13 : vector<16x8xf32> to vector<16x8xbf16>
    %cst_7 = arith.constant dense<0.000000e+00> : vector<16x8xf32>
    %15 = tpu.matmul %0, %14, %cst_7 {dimension_numbers = #tpu.dot_dimension_numbers<[1], [0], [0], [1], [0, 0, 1, 1], [], []>} : vector<16x16xbf16>, vector<16x8xbf16>, vector<16x8xf32> -> vector<16x8xf32>
    %16 = arith.addf %15, %13 : vector<16x8xf32>
    %17 = vector.broadcast %6 : vector<16x1xf32> to vector<16x8xf32>
    %18 = arith.mulf %17, %16 : vector<16x8xf32>
    %19 = arith.truncf %18 : vector<16x8xf32> to vector<16x8xbf16>
    %cst_8 = arith.constant dense<0.000000e+00> : vector<16x128xf32>
    %20 = tpu.matmul %19, %8, %cst_8 {dimension_numbers = #tpu.dot_dimension_numbers<[1], [0], [0], [1], [0, 0, 1, 1], [], []>} : vector<16x8xbf16>, vector<8x128xbf16>, vector<16x128xf32> -> vector<16x128xf32>
    %21 = vector.broadcast %10 : vector<1x128xf32> to vector<16x128xf32>
    %22 = arith.addf %20, %21 : vector<16x128xf32>
    %cst_9 = arith.constant 0.000000e+00 : f32
    %23 = vector.broadcast %cst_9 : f32 to vector<16x128xf32>
    %24 = arith.maximumf %22, %23 : vector<16x128xf32>
    %c16 = arith.constant 16 : index
    %c0_10 = arith.constant 0 : index
    %25 = vector.load %arg2[%c16, %c0_10] : memref<96x128xbf16, #tpu.memory_space<vmem>>, vector<32x128xbf16>
    %c48 = arith.constant 48 : index
    %c0_11 = arith.constant 0 : index
    %26 = vector.load %arg2[%c48, %c0_11] : memref<96x128xbf16, #tpu.memory_space<vmem>>, vector<1x128xbf16>
    %27 = arith.extf %26 : vector<1x128xbf16> to vector<1x128xf32>
    %28 = vector.extract_strided_slice %24 {offsets = [0, 0], sizes = [16, 32], strides = [1, 1]} : vector<16x128xf32> to vector<16x32xf32>
    %29 = vector.broadcast %6 : vector<16x1xf32> to vector<16x32xf32>
    %30 = arith.mulf %29, %28 : vector<16x32xf32>
    %31 = arith.truncf %30 : vector<16x32xf32> to vector<16x32xbf16>
    %cst_12 = arith.constant dense<0.000000e+00> : vector<16x32xf32>
    %32 = tpu.matmul %0, %31, %cst_12 {dimension_numbers = #tpu.dot_dimension_numbers<[1], [0], [0], [1], [0, 0, 1, 1], [], []>} : vector<16x16xbf16>, vector<16x32xbf16>, vector<16x32xf32> -> vector<16x32xf32>
    %33 = arith.addf %32, %30 : vector<16x32xf32>
    %34 = vector.broadcast %6 : vector<16x1xf32> to vector<16x32xf32>
    %35 = arith.mulf %34, %33 : vector<16x32xf32>
    %36 = arith.truncf %35 : vector<16x32xf32> to vector<16x32xbf16>
    %cst_13 = arith.constant dense<0.000000e+00> : vector<16x128xf32>
    %37 = tpu.matmul %36, %25, %cst_13 {dimension_numbers = #tpu.dot_dimension_numbers<[1], [0], [0], [1], [0, 0, 1, 1], [], []>} : vector<16x32xbf16>, vector<32x128xbf16>, vector<16x128xf32> -> vector<16x128xf32>
    %38 = vector.broadcast %27 : vector<1x128xf32> to vector<16x128xf32>
    %39 = arith.addf %37, %38 : vector<16x128xf32>
    %cst_14 = arith.constant 0.000000e+00 : f32
    %40 = vector.broadcast %cst_14 : f32 to vector<16x128xf32>
    %41 = arith.maximumf %39, %40 : vector<16x128xf32>
    %c56 = arith.constant 56 : index
    %c0_15 = arith.constant 0 : index
    %42 = vector.load %arg2[%c56, %c0_15] : memref<96x128xbf16, #tpu.memory_space<vmem>>, vector<32x128xbf16>
    %c88 = arith.constant 88 : index
    %c0_16 = arith.constant 0 : index
    %43 = vector.load %arg2[%c88, %c0_16] : memref<96x128xbf16, #tpu.memory_space<vmem>>, vector<1x128xbf16>
    %44 = arith.extf %43 : vector<1x128xbf16> to vector<1x128xf32>
    %45 = vector.extract_strided_slice %41 {offsets = [0, 0], sizes = [16, 32], strides = [1, 1]} : vector<16x128xf32> to vector<16x32xf32>
    %46 = vector.broadcast %6 : vector<16x1xf32> to vector<16x32xf32>
    %47 = arith.mulf %46, %45 : vector<16x32xf32>
    %48 = arith.truncf %47 : vector<16x32xf32> to vector<16x32xbf16>
    %cst_17 = arith.constant dense<0.000000e+00> : vector<16x32xf32>
    %49 = tpu.matmul %0, %48, %cst_17 {dimension_numbers = #tpu.dot_dimension_numbers<[1], [0], [0], [1], [0, 0, 1, 1], [], []>} : vector<16x16xbf16>, vector<16x32xbf16>, vector<16x32xf32> -> vector<16x32xf32>
    %50 = arith.addf %49, %47 : vector<16x32xf32>
    %51 = vector.broadcast %6 : vector<16x1xf32> to vector<16x32xf32>
    %52 = arith.mulf %51, %50 : vector<16x32xf32>
    %53 = arith.truncf %52 : vector<16x32xf32> to vector<16x32xbf16>
    %cst_18 = arith.constant dense<0.000000e+00> : vector<16x128xf32>
    %54 = tpu.matmul %53, %42, %cst_18 {dimension_numbers = #tpu.dot_dimension_numbers<[1], [0], [0], [1], [0, 0, 1, 1], [], []>} : vector<16x32xbf16>, vector<32x128xbf16>, vector<16x128xf32> -> vector<16x128xf32>
    %55 = vector.broadcast %44 : vector<1x128xf32> to vector<16x128xf32>
    %56 = arith.addf %54, %55 : vector<16x128xf32>
    %57 = tpu.iota {dimensions = array<i32: 1>} : vector<16x128xi32>
    %c4_i32 = arith.constant 4 : i32
    %58 = vector.broadcast %c4_i32 : i32 to vector<16x128xi32>
    %59 = arith.cmpi slt, %57, %58 : vector<16x128xi32>
    %cst_19 = arith.constant -1.000000e+30 : f32
    %60 = vector.broadcast %cst_19 : f32 to vector<16x128xf32>
    %61 = arith.select %59, %56, %60 : vector<16x128xi1>, vector<16x128xf32>
    %cst_20 = arith.constant dense<0xFF800000> : vector<16xf32>
    %62 = vector.multi_reduction <maximumf>, %61, %cst_20 [1] : vector<16x128xf32> to vector<16xf32>
    %63 = vector.shape_cast %62 : vector<16xf32> to vector<16x1xf32>
    %64 = vector.broadcast %63 : vector<16x1xf32> to vector<16x128xf32>
    %65 = arith.subf %61, %64 : vector<16x128xf32>
    %66 = math.exp %65 : vector<16x128xf32>
    %cst_21 = arith.constant dense<0.000000e+00> : vector<16xf32>
    %67 = vector.multi_reduction <add>, %66, %cst_21 [1] : vector<16x128xf32> to vector<16xf32>
    %68 = vector.shape_cast %67 : vector<16xf32> to vector<16x1xf32>
    %69 = tpu.reciprocal %68 {approx = true} : vector<16x1xf32> -> vector<16x1xf32>
    %70 = vector.broadcast %69 : vector<16x1xf32> to vector<16x128xf32>
    %71 = arith.mulf %66, %70 : vector<16x128xf32>
    %c0_22 = arith.constant 0 : index
    %c0_23 = arith.constant 0 : index
    %72 = vector.load %arg3[%c0_22, %c0_23] : memref<16x128xf32, #tpu.memory_space<vmem>>, vector<16x128xf32>
    tpu.vector_store %arg3[%c0_22, %c0_23], %71 {strides = array<i32>} : memref<16x128xf32, #tpu.memory_space<vmem>>, vector<16x128xf32>,
    return
  }
}

</mosaic_0001>

<bundles_post_ra>
// kernel: tpu_custom_call.1
= control target key start
LH: loop header
LB: loop body
LE: loop exit
PB: predicated region body
PF: predicated region fallthrough
CT: control target
= control target key end

     0   :  { %8 = vsyncpa [#allocation3], 0  ;;  %s787_s0 = inlined_call_operand.hbm [shape: bf16[16,16], index: 0, kind: input, shape index: {}]   ;;  %s788_s1 = inlined_call_operand.hbm [shape: f32[16,128], index: 1, kind: input, shape index: {}]   ;;  %s789_s2 = inlined_call_operand.hbm [shape: bf16[96,128], index: 2, kind: input, shape index: {}]   ;;  %s790_s3 = inlined_call_operand.hbm [shape: f32[16,128], index: 3, kind: output, shape index: {}]  }
   0x1   :  { %9 = vsyncpa [#allocation6], 0 }
   0x2   :  { %10 = vsyncpa [#allocation4], 0  ;;  %s646_s12 = smov [#allocation5]   ;;  %s552_s16 = scalar_lea.hbm %s788_s1, 256 }
   0x3   :  { %s28_s13 = sshll.u32 %s646_s12, 4  ;;  %p553_p0 = scmp.ne.s32.totalorder %s788_s1, %s552_s16  ;;  %s29_s13 = int_to_ptr.vmem [resolvable:$true] %s28_s13 }
   0x4   :  { %p556_p1 = scmp.lt.u32.totalorder %s552_s16, %s788_s1 }
   0x6   :  { %p558_p2 = pnand %p556_p1, %p553_p0 }
   0x8   :  { %561 = shalt.err (!%p558_p2)
}
   0x9   :  { %s562_s21 = scalar_lea.vmem %s29_s13, 256  ;;  %p567_p4 = scmp.lt.s32.totalorder %s29_s13, %s29_s13 }
   0xa   :  { %p563_p3 = scmp.ne.s32.totalorder %s29_s13, %s562_s21  ;;  %p568_p5 = scmp.lt.s32.totalorder %s562_s21, %s562_s21 }
   0xc   :  { %p569_p6 = por %p568_p5, %p567_p4 }
   0xe   :  { %p570_p7 = pnand %p569_p6, %p563_p3 }
  0x10   :  { %573 = shalt.err (!%p570_p7)
}
  0x11   :  { %s647_s22 = smov 128   ;;  %s648_s23 = smov 8  }
  0x12   :  { %34 = dma.hbm_to_vmem [thread:$0]  %s788_s1, 256, %s29_s13, [#allocation6], %s647_s22, %s647_s22, %s648_s23  }
  0x13   :  { %s649_s26 = smov [#allocation2]   ;;  %s574_s30 = scalar_lea.hbm %s787_s0, 128 }
  0x14   :  { %s16_s27 = sshll.u32 %s649_s26, 4  ;;  %p575_p8 = scmp.ne.s32.totalorder %s787_s0, %s574_s30  ;;  %s17_s27 = int_to_ptr.vmem [resolvable:$true] %s16_s27 }
  0x15   :  { %p578_p9 = scmp.lt.u32.totalorder %s574_s30, %s787_s0 }
  0x17   :  { %p580_p10 = pnand %p578_p9, %p575_p8 }
  0x19   :  { %583 = shalt.err (!%p580_p10)
}
  0x1a   :  { %s584_s8 = scalar_lea.vmem %s17_s27, 128  ;;  %p589_p12 = scmp.lt.s32.totalorder %s17_s27, %s17_s27 }
  0x1b   :  { %p585_p11 = scmp.ne.s32.totalorder %s17_s27, %s584_s8  ;;  %p590_p13 = scmp.lt.s32.totalorder %s584_s8, %s584_s8 }
  0x1d   :  { %p591_p0 = por %p590_p13, %p589_p12 }
  0x1f   :  { %p592_p1 = pnand %p591_p0, %p585_p11 }
  0x21   :  { %595 = shalt.err (!%p592_p1)
}
  0x22   :  { %s650_s1 = smov 64   ;;  %s651_s9 = smov 4  }
  0x23   :  { %22 = dma.hbm_to_vmem [thread:$0]  %s787_s0, 128, %s17_s27, [#allocation3], %s650_s1, %s650_s1, %s651_s9  }
  0x24   :  { %s652_s12 = smov [#allocation7]   ;;  %s596_s16 = scalar_lea.hbm %s789_s2, 768 }
  0x25   :  { %s40_s13 = sshll.u32 %s652_s12, 4  ;;  %p597_p2 = scmp.ne.s32.totalorder %s789_s2, %s596_s16  ;;  %s41_s13 = int_to_ptr.vmem [resolvable:$true] %s40_s13 }
  0x26   :  { %p600_p3 = scmp.lt.u32.totalorder %s596_s16, %s789_s2 }
  0x28   :  { %p602_p4 = pnand %p600_p3, %p597_p2 }
  0x2a   :  { %605 = shalt.err (!%p602_p4)
}
  0x2b   :  { %s606_s21 = scalar_lea.vmem %s41_s13, 768  ;;  %p611_p6 = scmp.lt.s32.totalorder %s41_s13, %s41_s13 }
  0x2c   :  { %p607_p5 = scmp.ne.s32.totalorder %s41_s13, %s606_s21  ;;  %p612_p7 = scmp.lt.s32.totalorder %s606_s21, %s606_s21 }
  0x2e   :  { %p613_p8 = por %p612_p7, %p611_p6 }
  0x30   :  { %p614_p9 = pnand %p613_p8, %p607_p5 }
  0x32   :  { %617 = shalt.err (!%p614_p9)
}
  0x33   :  { %46 = dma.hbm_to_vmem [thread:$0]  %s789_s2, 768, %s41_s13, [#allocation6], %s650_s1, %s650_s1, %s651_s9  }
  0x34   :  { %640 = dma.done.wait [#allocation3], 128  }
  0x35   :  { %641 = vsyncadd [#allocation3], 4294967168 }
  0x36   :  { %642 = dma.done.wait [#allocation6], 1024  }
  0x37   :  { %643 = vsyncadd [#allocation6], 4294966272  ;;  %v715_v0 = vld [vmem:[#allocation2] sm:$0xff]   ;;  %vm61_vm0 = vcmask 130048   ;;  %v653_v5 = vmov 0.0   ;;  %vm654_vm1 = vmmov 0   ;;  %v132_v28 = vlaneseq }
  0x38   :  { %v59_v1 = vunpack.c.l.bf16 %v715_v0  ;;  %v60_v2 = vunpack.c.h.bf16 %v715_v0  ;;  %484 = vmatprep.subr.bf16.mxu0 %v653_v5  ;;  %490 = vmatprep.subr.bf16.mxu1 %v653_v5  ;;  %v72_v11 = vld [vmem:[#allocation5] sm:$0xff]  ;;  %v73_v12 = vld [vmem:[#allocation5 + $0x8] sm:$0xff]  ;;  %v74_v17 = vld [vmem:[#allocation7] sm:$0xf]  ;;  %vm140_vm2 = vcmask 1043456   ;;  %vm136_vm3 = vcmask 64512  }
  0x39   :  { %486 = vmatprep.mubr.msk.bf16.mxu0 %vm654_vm1, %v653_v5  ;;  %492 = vmatprep.mubr.msk.bf16.mxu1 %vm654_vm1, %v653_v5  ;;  %v142_v18 = vsel %vm140_vm2, %v74_v17, 0  ;;  %v133_v29 = vshrl.u32 %v132_v28, 7  ;;  %v75_v30 = vld [vmem:[#allocation7 + $0x4] sm:$0x1]  ;;  %v535_v45 = vld [vmem:[#allocation7 + $0x8] sm:$0xff]   ;;  %v536_v46 = vld [vmem:[#allocation7 + $0x10] sm:$0xff]  }
  0x3a   :  { %v62_v3 = vsel %vm61_vm0, %v59_v1, 0.0  ;;  %v65_v4 = vsel %vm61_vm0, %v60_v2, 0.0  ;;  %491 = vmatpush3.bf16.msra.mxu1 %v142_v18  ;;  %v76_v31 = vunpack.c.l.bf16 %v75_v30  ;;  %vm256_vm4 = vcmask 261120   ;;  %v191_v56 = vld [vmem:[#allocation7 + $0x18] sm:$0x1]  ;;  %s655_s2 = smov [#allocation8]  }
  0x3b   :  { %63 = vadd.xlane.f32.xlu0 %v62_v3  ;;  %502 = vmatprep.subr.bf16.mxu1 %v653_v5  ;;  %v744_v32 = vsub.s32 0, %v133_v29  ;;  %v192_v57 = vunpack.c.l.bf16 %v191_v56  ;;  %s446_s25 = sshll.u32 %s655_s2, 4  ;;  %s447_s25 = int_to_ptr.vmem [resolvable:$true] %s446_s25 }
  0x3c   :  { %s618_s26 = scalar_lea.vmem %s447_s25, 256  ;;  %p623_p11 = scmp.lt.s32.totalorder %s447_s25, %s447_s25 }
  0x3d   :  { %v135_v33 = vrot.slane %v76_v31, %v744_v32  ;;  %v243_v58 = vrot.slane %v192_v57, %v744_v32  ;;  %p619_p10 = scmp.ne.s32.totalorder %s447_s25, %s618_s26  ;;  %p624_p12 = scmp.lt.s32.totalorder %s618_s26, %s618_s26 }
  0x3f   :  { %66 = vadd.xlane.f32.xlu0 %v65_v4  ;;  %p625_p13 = por %p624_p12, %p623_p11 }
  0x41   :  { %p626_p0 = pnand %p625_p13, %p619_p10 }
  0xc8   :  { %v64_v6 = vpop.xlane.xlu0 %63 }
  0xc9   :  { %v68_v7 = vadd.f32 1.0, %v64_v6 }
  0xcb   :  { %540 = vrsqrt.f32 %v68_v7 }
  0xcc   :  { %v67_v8 = vpop.xlane.xlu0 %66 }
  0xcd   :  { %v69_v9 = vadd.f32 1.0, %v67_v8  ;;  %v537_v8 = vld [vmem:[#allocation7 + $0x1c] sm:$0xff]  }
  0xcf   :  { %542 = vrsqrt.f32 %v69_v9  ;;  %v538_v9 = vld [vmem:[#allocation7 + $0x24] sm:$0xff]  }
  0xd5   :  { %v727_v10 = vpop.eup %540 }
  0xd6   :  { %v77_v14 = vmul.f32 %v727_v10, %v72_v11 }
  0xd9   :  { %v729_v13 = vpop.eup %542 }
  0xda   :  { %v78_v15 = vmul.f32 %v729_v13, %v73_v12 }
  0xdc   :  { %v79_v16 = vpack.c.bf16 %v78_v15, %v77_v14 }
  0xde   :  { %485 = vmatpush3.bf16.msra.mxu0 %v79_v16 }
  0xdf   :  { %496 = vmatprep.subr.bf16.mxu0 %v653_v5 }
  0xe1   :  { %487 = vmatmul.mubr.msk.bf16.vlgmr.msra.gmra.mrb[0].mxu0 %vm61_vm0, %v715_v0 }
  0xe2   :  { %498 = vmatprep.mubr.msk.bf16.mxu0 %vm654_vm1, %v653_v5 }
 0x1b4   :  { %v122_v19 = vpop.f32.mrb[0].mxu0 }
 0x1b5   :  { %v123_v20 = vadd.f32 %v122_v19, %v77_v14  ;;  %v488_v21 = vpop.f32.mrb[1].mxu0 }
 0x1b6   :  { %v125_v22 = vpop.f32.mrb[2].mxu0 }
 0x1b7   :  { %v126_v23 = vadd.f32 %v125_v22, %v78_v15  ;;  %v489_v24 = vpop.f32.mrb[3].mxu0  ;;  %v129_v25 = vmul.f32 %v727_v10, %v123_v20  ;;  %v417_v22 = vand.u32 127, %v132_v28 }
 0x1b9   :  { %v130_v26 = vmul.f32 %v729_v13, %v126_v23  ;;  %vm418_vm5 = vcmp.lt.s32.totalorder %v417_v22, 4 }
 0x1bb   :  { %v131_v27 = vpack.c.bf16 %v130_v26, %v129_v25 }
 0x1bd   :  { %493 = vmatmul.mubr.msk.bf16.vlgmr.msra.gmra.mrb[0].mxu1 %vm136_vm3, %v131_v27 }
 0x1be   :  { %506 = vmatprep.mubr.msk.bf16.mxu1 %vm654_vm1, %v653_v5  ;;  %503 = vmatpush3.bf16.msra.mxu1 %v535_v45 }
 0x1bf   :  { %504 = vmatprep.subr.bf16.mxu1 %v653_v5 }
 0x1c2   :  { %505 = vmatpush3.bf16.msra.mxu1 %v536_v46 }
 0x1c3   :  { %516 = vmatprep.subr.bf16.mxu1 %v653_v5 }
 0x290   :  { %v178_v34 = vpop.f32.mrb[0].mxu1 }
 0x291   :  { %v179_v35 = vadd.f32 %v178_v34, %v135_v33  ;;  %v494_v36 = vpop.f32.mrb[1].mxu1 }
 0x292   :  { %v181_v37 = vpop.f32.mrb[2].mxu1 }
 0x293   :  { %v185_v38 = vmax.f32 %v179_v35, 0.0  ;;  %v182_v39 = vadd.f32 %v181_v37, %v135_v33  ;;  %v495_v40 = vpop.f32.mrb[3].mxu1 }
 0x295   :  { %v186_v41 = vmax.f32 %v182_v39, 0.0  ;;  %v193_v42 = vmul.f32 %v727_v10, %v185_v38 }
 0x297   :  { %v194_v43 = vmul.f32 %v729_v13, %v186_v41 }
 0x299   :  { %v195_v44 = vpack.c.bf16 %v194_v43, %v193_v42 }
 0x29b   :  { %497 = vmatpush3.bf16.msra.mxu0 %v195_v44 }
 0x29c   :  { %510 = vmatprep.subr.bf16.mxu0 %v653_v5 }
 0x29e   :  { %499 = vmatmul.mubr.msk.bf16.vlgmr.msra.gmra.mrb[4].mxu0 %vm61_vm0, %v715_v0 }
 0x29f   :  { %512 = vmatprep.mubr.msk.bf16.mxu0 %vm654_vm1, %v653_v5 }
 0x371   :  { %v230_v47 = vpop.f32.mrb[4].mxu0 }
 0x372   :  { %v231_v48 = vadd.f32 %v230_v47, %v193_v42  ;;  %v500_v49 = vpop.f32.mrb[5].mxu0 }
 0x373   :  { %v233_v50 = vpop.f32.mrb[6].mxu0 }
 0x374   :  { %v234_v51 = vadd.f32 %v233_v50, %v194_v43  ;;  %v501_v52 = vpop.f32.mrb[7].mxu0  ;;  %v237_v53 = vmul.f32 %v727_v10, %v231_v48 }
 0x376   :  { %v238_v54 = vmul.f32 %v729_v13, %v234_v51 }
 0x378   :  { %v239_v55 = vpack.c.bf16 %v238_v54, %v237_v53 }
 0x37a   :  { %507 = vmatmul.mubr.msk.bf16.vlgmr.msra.gmra.mrb[4].mxu1 %vm256_vm4, %v239_v55 }
 0x37b   :  { %520 = vmatprep.mubr.msk.bf16.mxu1 %vm654_vm1, %v653_v5  ;;  %517 = vmatpush3.bf16.msra.mxu1 %v537_v8 }
 0x37c   :  { %518 = vmatprep.subr.bf16.mxu1 %v653_v5 }
 0x37f   :  { %519 = vmatpush3.bf16.msra.mxu1 %v538_v9 }
 0x44d   :  { %v294_v59 = vpop.f32.mrb[4].mxu1 }
 0x44e   :  { %v295_v60 = vadd.f32 %v294_v59, %v243_v58  ;;  %v508_v61 = vpop.f32.mrb[5].mxu1 }
 0x44f   :  { %v297_v62 = vpop.f32.mrb[6].mxu1 }
 0x450   :  { %v301_v63 = vmax.f32 %v295_v60, 0.0  ;;  %v298_v1 = vadd.f32 %v297_v62, %v243_v58  ;;  %v509_v2 = vpop.f32.mrb[7].mxu1 }
 0x452   :  { %v302_v3 = vmax.f32 %v298_v1, 0.0  ;;  %v309_v4 = vmul.f32 %v727_v10, %v301_v63 }
 0x454   :  { %v310_v6 = vmul.f32 %v729_v13, %v302_v3 }
 0x456   :  { %v311_v7 = vpack.c.bf16 %v310_v6, %v309_v4 }
 0x458   :  { %511 = vmatpush3.bf16.msra.mxu0 %v311_v7 }
 0x45b   :  { %513 = vmatmul.mubr.msk.bf16.vlgmr.msra.gmra.mrb[8].mxu0 %vm61_vm0, %v715_v0  ;;  %v307_v0 = vld [vmem:[#allocation7 + $0x2c] sm:$0x1] }
 0x45c   :  { %v308_v21 = vunpack.c.l.bf16 %v307_v0 }
 0x45e   :  { %v359_v5 = vrot.slane %v308_v21, %v744_v32 }
 0x52e   :  { %v346_v11 = vpop.f32.mrb[8].mxu0 }
 0x52f   :  { %v347_v12 = vadd.f32 %v346_v11, %v309_v4  ;;  %v514_v14 = vpop.f32.mrb[9].mxu0 }
 0x530   :  { %v349_v15 = vpop.f32.mrb[10].mxu0 }
 0x531   :  { %v350_v16 = vadd.f32 %v349_v15, %v310_v6  ;;  %v515_v17 = vpop.f32.mrb[11].mxu0  ;;  %v353_v18 = vmul.f32 %v727_v10, %v347_v12 }
 0x533   :  { %v354_v19 = vmul.f32 %v729_v13, %v350_v16 }
 0x535   :  { %v355_v20 = vpack.c.bf16 %v354_v19, %v353_v18 }
 0x537   :  { %521 = vmatmul.mubr.msk.bf16.vlgmr.msra.gmra.mrb[8].mxu1 %vm256_vm4, %v355_v20 }
 0x60a   :  { %v409_v23 = vpop.f32.mrb[8].mxu1 }
 0x60b   :  { %v410_v24 = vadd.f32 %v409_v23, %v359_v5  ;;  %v522_v25 = vpop.f32.mrb[9].mxu1 }
 0x60c   :  { %v412_v26 = vpop.f32.mrb[10].mxu1 }
 0x60d   :  { %v413_v27 = vadd.f32 %v412_v26, %v359_v5  ;;  %v523_v29 = vpop.f32.mrb[11].mxu1  ;;  %v419_v30 = vsel %vm418_vm5, %v410_v24, -1e+30 }
 0x60e   :  { %421 = vmax.xlane.f32.xlu1 %v419_v30 }
 0x60f   :  { %v420_v10 = vsel %vm418_vm5, %v413_v27, -1e+30 }
 0x612   :  { %423 = vmax.xlane.f32.xlu1 %v420_v10 }
 0x69b   :  { %v422_v13 = vpop.xlane.xlu1 %421 }
 0x69c   :  { %v425_v31 = vsub.f32 %v419_v30, %v422_v13 }
 0x69e   :  { %v427_v33 = vmul.f32 1.442695, %v425_v31 }
 0x69f   :  { %v424_v34 = vpop.xlane.xlu1 %423 }
 0x6a0   :  { %544 = vpow2.f32 %v427_v33  ;;  %v426_v35 = vsub.f32 %v420_v10, %v424_v34 }
 0x6a2   :  { %v429_v28 = vmul.f32 1.442695, %v426_v35 }
 0x6a4   :  { %546 = vpow2.f32 %v429_v28 }
 0x6aa   :  { %v545_v32 = vpop.eup %544 }
 0x6ab   :  { %431 = vadd.xlane.f32.xlu0 %v545_v32 }
 0x6ae   :  { %v547_v36 = vpop.eup %546 }
 0x6af   :  { %433 = vadd.xlane.f32.xlu1 %v547_v36 }
 0x738   :  { %v432_v37 = vpop.xlane.xlu0 %431 }
 0x739   :  { %548 = vrcp.f32 %v432_v37 }
 0x73c   :  { %v434_v38 = vpop.xlane.xlu1 %433 }
 0x73d   :  { %550 = vrcp.f32 %v434_v38 }
 0x743   :  { %v549_v39 = vpop.eup %548 }
 0x744   :  { %v437_v40 = vmul.f32 %v549_v39, %v545_v32 }
 0x746   :  { %439 = vst [vmem:[#allocation8] sm:$0xff] %v437_v40 }
 0x747   :  { %v551_v41 = vpop.eup %550 }
 0x748   :  { %v438_v42 = vmul.f32 %v551_v41, %v547_v36 }
 0x74a   :  { %440 = vst [vmem:[#allocation8 + $0x8] sm:$0xff] %v438_v42 }
 0x74b   :  { %629 = shalt.err (!%p626_p0)
}
 0x74c   :  { %s630_s29 = scalar_lea.hbm %s790_s3, 256 }
 0x74d   :  { %p631_p1 = scmp.ne.s32.totalorder %s790_s3, %s630_s29  ;;  %p634_p2 = scmp.lt.u32.totalorder %s630_s29, %s790_s3 }
 0x74f   :  { %p636_p3 = pnand %p634_p2, %p631_p1 }
 0x751   :  { %639 = shalt.err (!%p636_p3)
}
 0x752   :  { %452 = dma.vmem_to_hbm [thread:$0]  %s447_s25, 256, %s790_s3, [#allocation4], %s647_s22, %s647_s22, %s648_s23  }
 0x753   :  { %644 = dma.done.wait [#allocation4], 256  }
 0x754   :  { %645 = vsyncadd [#allocation4], 4294967040 }
 0x755   :  { %456 = vsyncpa [#allocation3], 1 }
 0x756   :  { %457 = vsyncpa [#allocation6], 1 }
 0x757   :  { %458 = vsyncpa [#allocation4], 1 }

</bundles_post_ra>
